<compile_context>
chip_gen: v6e
topology: v6e:2x2x1
jax: 0.10.0
libtpu: 0.0.40
codegen_flags: <defaults>
</compile_context>

<pallas_src>
import functools

import jax
import jax.numpy as jnp
from jax import lax
from jax.experimental import pallas as pl
from jax.experimental.pallas import tpu as pltpu

NUM_ACTIONS = 2  # len(['action A', 'action B'])
HIDDEN = 16
IN_FEATURES = 2

LANE = 128
SUBLANE = 8
MIN_BLOCK = LANE * SUBLANE  # 1024 batch elements = one full (8, 128) f32 tile


def _round_up(n, m):
    return ((n + m - 1) // m) * m


def _make_qnet_kernel(chunk_rows: int, num_chunks: int):
    """Build the fused fc1 -> ReLU -> fc2 kernel for a fixed chunking.

    x_ref : (IN_FEATURES, TR, 128) VMEM   -- batch on sublane/lane axes
    o_ref : (NUM_ACTIONS, TR, 128) VMEM
    w1    : (HIDDEN, IN_FEATURES) SMEM    -- PyTorch (out, in) layout
    b1    : (HIDDEN,)             SMEM
    w2    : (NUM_ACTIONS, HIDDEN) SMEM
    b2    : (NUM_ACTIONS,)        SMEM
    """

    def kernel(w1_ref, b1_ref, w2_ref, b2_ref, x_ref, o_ref):
        # Hoist all scalar weight/bias reads (SMEM) out of the chunk loop.
        w1 = [[w1_ref[j, k] for k in range(IN_FEATURES)] for j in range(HIDDEN)]
        b1 = [b1_ref[j] for j in range(HIDDEN)]
        w2 = [[w2_ref[a, j] for j in range(HIDDEN)] for a in range(NUM_ACTIONS)]
        b2 = [b2_ref[a] for a in range(NUM_ACTIONS)]

        def chunk_body(c, carry):
            start = c * chunk_rows
            if not isinstance(start, int):
                start = pl.multiple_of(start, chunk_rows)
            rows = pl.ds(start, chunk_rows)

            x0 = x_ref[0, rows, :]  # (chunk_rows, 128) f32, fully dense
            x1 = x_ref[1, rows, :]

            # Accumulators start from the (broadcast) fc2 bias.
            o0 = jnp.full(x0.shape, b2[0], jnp.float32)
            o1 = jnp.full(x0.shape, b2[1], jnp.float32)

            # Static unroll over the 16 hidden units: pure VPU broadcast-FMA
            # chain; hidden activations never materialize as a (16, B) matrix.
            for j in range(HIDDEN):
                h = jnp.maximum(w1[j][0] * x0 + w1[j][1] * x1 + b1[j], 0.0)
                o0 = o0 + w2[0][j] * h
                o1 = o1 + w2[1][j] * h

            o_ref[0, rows, :] = o0.astype(o_ref.dtype)
            o_ref[1, rows, :] = o1.astype(o_ref.dtype)
            return carry

        if num_chunks == 1:
            chunk_body(0, 0)
        else:
            # fori_loop bounds the live vreg set to one chunk's working set.
            lax.fori_loop(0, num_chunks, chunk_body, 0)

    return kernel


@functools.partial(jax.jit, static_argnames=("target_block_batch",))
def qnetwork_forward(x, w1, b1, w2, b2, *, target_block_batch=32768):
    """x: (B, 2) float32 -> (B, NUM_ACTIONS) float32.

    Weights are in PyTorch nn.Linear layout: w1 (16, 2), b1 (16,),
    w2 (2, 16), b2 (2,).
    """
    B = x.shape[0]

    # Pick a batch tile: whole (padded) batch if small, else a fixed block
    # that is a multiple of one (8, 128) register tile.
    if B <= target_block_batch:
        block_batch = _round_up(max(B, 1), MIN_BLOCK)
    else:
        block_batch = _round_up(target_block_batch, MIN_BLOCK)
    B_pad = _round_up(B, block_batch)

    if B_pad != B:
        x = jnp.pad(x, ((0, B_pad - B), (0, 0)))

    # (B_pad, 2) -> (2, B_pad) -> (2, R, 128): batch on sublane/lane axes.
    R = B_pad // LANE
    TR = block_batch // LANE  # multiple of 8

    # Chunk rows so the per-iteration live set stays well under 64 vregs.
    if TR % 32 == 0:
        chunk_rows = 32
    elif TR % 16 == 0:
        chunk_rows = 16
    else:
        chunk_rows = 8
    num_chunks = TR // chunk_rows

    x3 = x.T.reshape(IN_FEATURES, R, LANE)

    smem = pl.BlockSpec(memory_space=pltpu.MemorySpace.SMEM)

    out3 = pl.pallas_call(
        _make_qnet_kernel(chunk_rows, num_chunks),
        out_shape=jax.ShapeDtypeStruct((NUM_ACTIONS, R, LANE), jnp.float32),
        grid=(B_pad // block_batch,),
        in_specs=[
            smem,  # w1 (16, 2)
            smem,  # b1 (16,)
            smem,  # w2 (2, 16)
            smem,  # b2 (2,)
            pl.BlockSpec((IN_FEATURES, TR, LANE), lambda i: (0, i, 0)),
        ],
        out_specs=pl.BlockSpec((NUM_ACTIONS, TR, LANE), lambda i: (0, i, 0)),
        compiler_params=pltpu.CompilerParams(
            dimension_semantics=("parallel",),
        ),
    )(w1, b1, w2, b2, x3)

    # (2, R, 128) -> (2, B_pad) -> (B_pad, 2) -> strip padding.
    return out3.reshape(NUM_ACTIONS, B_pad).T[:B]


def init_params(key):
    """Deterministic init mimicking PyTorch nn.Linear defaults
    (uniform(-1/sqrt(fan_in), 1/sqrt(fan_in))), PyTorch (out, in) layout."""
    k1, k2, k3, k4 = jax.random.split(key, 4)
    bound1 = IN_FEATURES ** -0.5
    bound2 = HIDDEN ** -0.5
    w1 = jax.random.uniform(k1, (HIDDEN, IN_FEATURES), jnp.float32, -bound1, bound1)
    b1 = jax.random.uniform(k2, (HIDDEN,), jnp.float32, -bound1, bound1)
    w2 = jax.random.uniform(k3, (NUM_ACTIONS, HIDDEN), jnp.float32, -bound2, bound2)
    b2 = jax.random.uniform(k4, (NUM_ACTIONS,), jnp.float32, -bound2, bound2)
    return w1, b1, w2, b2


def reference_forward(x, w1, b1, w2, b2):
    h = jnp.maximum(x @ w1.T + b1, 0.0)
    return h @ w2.T + b2


if __name__ == "__main__":
    key = jax.random.PRNGKey(0)
    k_params, k_x1, k_x2 = jax.random.split(key, 3)

    w1, b1, w2, b2 = init_params(k_params)

    # Case 1: tiny batch matching the original RL usage (nn.Linear(2, 16)).
    B1 = 8
    x1 = jax.random.normal(k_x1, (B1, IN_FEATURES), jnp.float32)
    out1 = jax.block_until_ready(qnetwork_forward(x1, w1, b1, w2, b2))
    ref1 = reference_forward(x1, w1, b1, w2, b2)
    assert out1.shape == (B1, NUM_ACTIONS)
    assert jnp.allclose(out1, ref1, atol=1e-5, rtol=1e-5), "mismatch (small batch)"

    # Case 2: mid-size batch, single grid step, multi-chunk inner fori_loop
    # (B_pad = 5120 -> TR = 40 -> 5 chunks of 8 sublane rows).
    B2 = 4133
    x2 = jax.random.normal(k_x2, (B2, IN_FEATURES), jnp.float32)
    ref2 = reference_forward(x2, w1, b1, w2, b2)

    out2a = jax.block_until_ready(qnetwork_forward(x2, w1, b1, w2, b2))
    assert out2a.shape == (B2, NUM_ACTIONS)
    assert jnp.allclose(out2a, ref2, atol=1e-5, rtol=1e-5), "mismatch (chunked)"

    # Case 3: same batch forced through a tiled pipelined grid (3 steps of 2048)
    # with a padded tail.
    out2b = jax.block_until_ready(
        qnetwork_forward(x2, w1, b1, w2, b2, target_block_batch=2048)
    )
    assert out2b.shape == (B2, NUM_ACTIONS)
    assert jnp.allclose(out2b, ref2, atol=1e-5, rtol=1e-5), "mismatch (tiled batch)"

    print("KERNEL_OK")
</pallas_src>

<mosaic_0001>
module attributes {stable_mosaic.version = 11 : i64} {
  func.func @kernel(%arg0: i32, %arg1: memref<16x2xf32, #tpu.memory_space<smem>>, %arg2: memref<16xf32, #tpu.memory_space<smem>>, %arg3: memref<2x16xf32, #tpu.memory_space<smem>>, %arg4: memref<2xf32, #tpu.memory_space<smem>>, %arg5: memref<2x8x128xf32, #tpu.memory_space<vmem>>, %arg6: memref<2x8x128xf32, #tpu.memory_space<vmem>>) attributes {dimension_semantics = [#tpu.dimension_semantics<parallel>], iteration_bounds = array<i64: 1>, scalar_prefetch = 0 : i64, scratch_operands = 0 : i64, tpu.core_type = #tpu.core_type<tc>, window_params = [{transform_indices = @transform_0, window_bounds = array<i64: 16, 2>}, {transform_indices = @transform_1, window_bounds = array<i64: 16>}, {transform_indices = @transform_2, window_bounds = array<i64: 2, 16>}, {transform_indices = @transform_3, window_bounds = array<i64: 2>}, {transform_indices = @transform_4, window_bounds = array<i64: 2, 8, 128>}, {transform_indices = @transform_5, window_bounds = array<i64: 2, 8, 128>}]} {
    %c0 = arith.constant 0 : index
    %c0_0 = arith.constant 0 : index
    %0 = memref.load %arg1[%c0, %c0_0] : memref<16x2xf32, #tpu.memory_space<smem>>
    %c0_1 = arith.constant 0 : index
    %c1 = arith.constant 1 : index
    %1 = memref.load %arg1[%c0_1, %c1] : memref<16x2xf32, #tpu.memory_space<smem>>
    %c1_2 = arith.constant 1 : index
    %c0_3 = arith.constant 0 : index
    %2 = memref.load %arg1[%c1_2, %c0_3] : memref<16x2xf32, #tpu.memory_space<smem>>
    %c1_4 = arith.constant 1 : index
    %c1_5 = arith.constant 1 : index
    %3 = memref.load %arg1[%c1_4, %c1_5] : memref<16x2xf32, #tpu.memory_space<smem>>
    %c2 = arith.constant 2 : index
    %c0_6 = arith.constant 0 : index
    %4 = memref.load %arg1[%c2, %c0_6] : memref<16x2xf32, #tpu.memory_space<smem>>
    %c2_7 = arith.constant 2 : index
    %c1_8 = arith.constant 1 : index
    %5 = memref.load %arg1[%c2_7, %c1_8] : memref<16x2xf32, #tpu.memory_space<smem>>
    %c3 = arith.constant 3 : index
    %c0_9 = arith.constant 0 : index
    %6 = memref.load %arg1[%c3, %c0_9] : memref<16x2xf32, #tpu.memory_space<smem>>
    %c3_10 = arith.constant 3 : index
    %c1_11 = arith.constant 1 : index
    %7 = memref.load %arg1[%c3_10, %c1_11] : memref<16x2xf32, #tpu.memory_space<smem>>
    %c4 = arith.constant 4 : index
    %c0_12 = arith.constant 0 : index
    %8 = memref.load %arg1[%c4, %c0_12] : memref<16x2xf32, #tpu.memory_space<smem>>
    %c4_13 = arith.constant 4 : index
    %c1_14 = arith.constant 1 : index
    %9 = memref.load %arg1[%c4_13, %c1_14] : memref<16x2xf32, #tpu.memory_space<smem>>
    %c5 = arith.constant 5 : index
    %c0_15 = arith.constant 0 : index
    %10 = memref.load %arg1[%c5, %c0_15] : memref<16x2xf32, #tpu.memory_space<smem>>
    %c5_16 = arith.constant 5 : index
    %c1_17 = arith.constant 1 : index
    %11 = memref.load %arg1[%c5_16, %c1_17] : memref<16x2xf32, #tpu.memory_space<smem>>
    %c6 = arith.constant 6 : index
    %c0_18 = arith.constant 0 : index
    %12 = memref.load %arg1[%c6, %c0_18] : memref<16x2xf32, #tpu.memory_space<smem>>
    %c6_19 = arith.constant 6 : index
    %c1_20 = arith.constant 1 : index
    %13 = memref.load %arg1[%c6_19, %c1_20] : memref<16x2xf32, #tpu.memory_space<smem>>
    %c7 = arith.constant 7 : index
    %c0_21 = arith.constant 0 : index
    %14 = memref.load %arg1[%c7, %c0_21] : memref<16x2xf32, #tpu.memory_space<smem>>
    %c7_22 = arith.constant 7 : index
    %c1_23 = arith.constant 1 : index
    %15 = memref.load %arg1[%c7_22, %c1_23] : memref<16x2xf32, #tpu.memory_space<smem>>
    %c8 = arith.constant 8 : index
    %c0_24 = arith.constant 0 : index
    %16 = memref.load %arg1[%c8, %c0_24] : memref<16x2xf32, #tpu.memory_space<smem>>
    %c8_25 = arith.constant 8 : index
    %c1_26 = arith.constant 1 : index
    %17 = memref.load %arg1[%c8_25, %c1_26] : memref<16x2xf32, #tpu.memory_space<smem>>
    %c9 = arith.constant 9 : index
    %c0_27 = arith.constant 0 : index
    %18 = memref.load %arg1[%c9, %c0_27] : memref<16x2xf32, #tpu.memory_space<smem>>
    %c9_28 = arith.constant 9 : index
    %c1_29 = arith.constant 1 : index
    %19 = memref.load %arg1[%c9_28, %c1_29] : memref<16x2xf32, #tpu.memory_space<smem>>
    %c10 = arith.constant 10 : index
    %c0_30 = arith.constant 0 : index
    %20 = memref.load %arg1[%c10, %c0_30] : memref<16x2xf32, #tpu.memory_space<smem>>
    %c10_31 = arith.constant 10 : index
    %c1_32 = arith.constant 1 : index
    %21 = memref.load %arg1[%c10_31, %c1_32] : memref<16x2xf32, #tpu.memory_space<smem>>
    %c11 = arith.constant 11 : index
    %c0_33 = arith.constant 0 : index
    %22 = memref.load %arg1[%c11, %c0_33] : memref<16x2xf32, #tpu.memory_space<smem>>
    %c11_34 = arith.constant 11 : index
    %c1_35 = arith.constant 1 : index
    %23 = memref.load %arg1[%c11_34, %c1_35] : memref<16x2xf32, #tpu.memory_space<smem>>
    %c12 = arith.constant 12 : index
    %c0_36 = arith.constant 0 : index
    %24 = memref.load %arg1[%c12, %c0_36] : memref<16x2xf32, #tpu.memory_space<smem>>
    %c12_37 = arith.constant 12 : index
    %c1_38 = arith.constant 1 : index
    %25 = memref.load %arg1[%c12_37, %c1_38] : memref<16x2xf32, #tpu.memory_space<smem>>
    %c13 = arith.constant 13 : index
    %c0_39 = arith.constant 0 : index
    %26 = memref.load %arg1[%c13, %c0_39] : memref<16x2xf32, #tpu.memory_space<smem>>
    %c13_40 = arith.constant 13 : index
    %c1_41 = arith.constant 1 : index
    %27 = memref.load %arg1[%c13_40, %c1_41] : memref<16x2xf32, #tpu.memory_space<smem>>
    %c14 = arith.constant 14 : index
    %c0_42 = arith.constant 0 : index
    %28 = memref.load %arg1[%c14, %c0_42] : memref<16x2xf32, #tpu.memory_space<smem>>
    %c14_43 = arith.constant 14 : index
    %c1_44 = arith.constant 1 : index
    %29 = memref.load %arg1[%c14_43, %c1_44] : memref<16x2xf32, #tpu.memory_space<smem>>
    %c15 = arith.constant 15 : index
    %c0_45 = arith.constant 0 : index
    %30 = memref.load %arg1[%c15, %c0_45] : memref<16x2xf32, #tpu.memory_space<smem>>
    %c15_46 = arith.constant 15 : index
    %c1_47 = arith.constant 1 : index
    %31 = memref.load %arg1[%c15_46, %c1_47] : memref<16x2xf32, #tpu.memory_space<smem>>
    %c0_48 = arith.constant 0 : index
    %32 = memref.load %arg2[%c0_48] : memref<16xf32, #tpu.memory_space<smem>>
    %c1_49 = arith.constant 1 : index
    %33 = memref.load %arg2[%c1_49] : memref<16xf32, #tpu.memory_space<smem>>
    %c2_50 = arith.constant 2 : index
    %34 = memref.load %arg2[%c2_50] : memref<16xf32, #tpu.memory_space<smem>>
    %c3_51 = arith.constant 3 : index
    %35 = memref.load %arg2[%c3_51] : memref<16xf32, #tpu.memory_space<smem>>
    %c4_52 = arith.constant 4 : index
    %36 = memref.load %arg2[%c4_52] : memref<16xf32, #tpu.memory_space<smem>>
    %c5_53 = arith.constant 5 : index
    %37 = memref.load %arg2[%c5_53] : memref<16xf32, #tpu.memory_space<smem>>
    %c6_54 = arith.constant 6 : index
    %38 = memref.load %arg2[%c6_54] : memref<16xf32, #tpu.memory_space<smem>>
    %c7_55 = arith.constant 7 : index
    %39 = memref.load %arg2[%c7_55] : memref<16xf32, #tpu.memory_space<smem>>
    %c8_56 = arith.constant 8 : index
    %40 = memref.load %arg2[%c8_56] : memref<16xf32, #tpu.memory_space<smem>>
    %c9_57 = arith.constant 9 : index
    %41 = memref.load %arg2[%c9_57] : memref<16xf32, #tpu.memory_space<smem>>
    %c10_58 = arith.constant 10 : index
    %42 = memref.load %arg2[%c10_58] : memref<16xf32, #tpu.memory_space<smem>>
    %c11_59 = arith.constant 11 : index
    %43 = memref.load %arg2[%c11_59] : memref<16xf32, #tpu.memory_space<smem>>
    %c12_60 = arith.constant 12 : index
    %44 = memref.load %arg2[%c12_60] : memref<16xf32, #tpu.memory_space<smem>>
    %c13_61 = arith.constant 13 : index
    %45 = memref.load %arg2[%c13_61] : memref<16xf32, #tpu.memory_space<smem>>
    %c14_62 = arith.constant 14 : index
    %46 = memref.load %arg2[%c14_62] : memref<16xf32, #tpu.memory_space<smem>>
    %c15_63 = arith.constant 15 : index
    %47 = memref.load %arg2[%c15_63] : memref<16xf32, #tpu.memory_space<smem>>
    %c0_64 = arith.constant 0 : index
    %c0_65 = arith.constant 0 : index
    %48 = memref.load %arg3[%c0_64, %c0_65] : memref<2x16xf32, #tpu.memory_space<smem>>
    %c0_66 = arith.constant 0 : index
    %c1_67 = arith.constant 1 : index
    %49 = memref.load %arg3[%c0_66, %c1_67] : memref<2x16xf32, #tpu.memory_space<smem>>
    %c0_68 = arith.constant 0 : index
    %c2_69 = arith.constant 2 : index
    %50 = memref.load %arg3[%c0_68, %c2_69] : memref<2x16xf32, #tpu.memory_space<smem>>
    %c0_70 = arith.constant 0 : index
    %c3_71 = arith.constant 3 : index
    %51 = memref.load %arg3[%c0_70, %c3_71] : memref<2x16xf32, #tpu.memory_space<smem>>
    %c0_72 = arith.constant 0 : index
    %c4_73 = arith.constant 4 : index
    %52 = memref.load %arg3[%c0_72, %c4_73] : memref<2x16xf32, #tpu.memory_space<smem>>
    %c0_74 = arith.constant 0 : index
    %c5_75 = arith.constant 5 : index
    %53 = memref.load %arg3[%c0_74, %c5_75] : memref<2x16xf32, #tpu.memory_space<smem>>
    %c0_76 = arith.constant 0 : index
    %c6_77 = arith.constant 6 : index
    %54 = memref.load %arg3[%c0_76, %c6_77] : memref<2x16xf32, #tpu.memory_space<smem>>
    %c0_78 = arith.constant 0 : index
    %c7_79 = arith.constant 7 : index
    %55 = memref.load %arg3[%c0_78, %c7_79] : memref<2x16xf32, #tpu.memory_space<smem>>
    %c0_80 = arith.constant 0 : index
    %c8_81 = arith.constant 8 : index
    %56 = memref.load %arg3[%c0_80, %c8_81] : memref<2x16xf32, #tpu.memory_space<smem>>
    %c0_82 = arith.constant 0 : index
    %c9_83 = arith.constant 9 : index
    %57 = memref.load %arg3[%c0_82, %c9_83] : memref<2x16xf32, #tpu.memory_space<smem>>
    %c0_84 = arith.constant 0 : index
    %c10_85 = arith.constant 10 : index
    %58 = memref.load %arg3[%c0_84, %c10_85] : memref<2x16xf32, #tpu.memory_space<smem>>
    %c0_86 = arith.constant 0 : index
    %c11_87 = arith.constant 11 : index
    %59 = memref.load %arg3[%c0_86, %c11_87] : memref<2x16xf32, #tpu.memory_space<smem>>
    %c0_88 = arith.constant 0 : index
    %c12_89 = arith.constant 12 : index
    %60 = memref.load %arg3[%c0_88, %c12_89] : memref<2x16xf32, #tpu.memory_space<smem>>
    %c0_90 = arith.constant 0 : index
    %c13_91 = arith.constant 13 : index
    %61 = memref.load %arg3[%c0_90, %c13_91] : memref<2x16xf32, #tpu.memory_space<smem>>
    %c0_92 = arith.constant 0 : index
    %c14_93 = arith.constant 14 : index
    %62 = memref.load %arg3[%c0_92, %c14_93] : memref<2x16xf32, #tpu.memory_space<smem>>
    %c0_94 = arith.constant 0 : index
    %c15_95 = arith.constant 15 : index
    %63 = memref.load %arg3[%c0_94, %c15_95] : memref<2x16xf32, #tpu.memory_space<smem>>
    %c1_96 = arith.constant 1 : index
    %c0_97 = arith.constant 0 : index
    %64 = memref.load %arg3[%c1_96, %c0_97] : memref<2x16xf32, #tpu.memory_space<smem>>
    %c1_98 = arith.constant 1 : index
    %c1_99 = arith.constant 1 : index
    %65 = memref.load %arg3[%c1_98, %c1_99] : memref<2x16xf32, #tpu.memory_space<smem>>
    %c1_100 = arith.constant 1 : index
    %c2_101 = arith.constant 2 : index
    %66 = memref.load %arg3[%c1_100, %c2_101] : memref<2x16xf32, #tpu.memory_space<smem>>
    %c1_102 = arith.constant 1 : index
    %c3_103 = arith.constant 3 : index
    %67 = memref.load %arg3[%c1_102, %c3_103] : memref<2x16xf32, #tpu.memory_space<smem>>
    %c1_104 = arith.constant 1 : index
    %c4_105 = arith.constant 4 : index
    %68 = memref.load %arg3[%c1_104, %c4_105] : memref<2x16xf32, #tpu.memory_space<smem>>
    %c1_106 = arith.constant 1 : index
    %c5_107 = arith.constant 5 : index
    %69 = memref.load %arg3[%c1_106, %c5_107] : memref<2x16xf32, #tpu.memory_space<smem>>
    %c1_108 = arith.constant 1 : index
    %c6_109 = arith.constant 6 : index
    %70 = memref.load %arg3[%c1_108, %c6_109] : memref<2x16xf32, #tpu.memory_space<smem>>
    %c1_110 = arith.constant 1 : index
    %c7_111 = arith.constant 7 : index
    %71 = memref.load %arg3[%c1_110, %c7_111] : memref<2x16xf32, #tpu.memory_space<smem>>
    %c1_112 = arith.constant 1 : index
    %c8_113 = arith.constant 8 : index
    %72 = memref.load %arg3[%c1_112, %c8_113] : memref<2x16xf32, #tpu.memory_space<smem>>
    %c1_114 = arith.constant 1 : index
    %c9_115 = arith.constant 9 : index
    %73 = memref.load %arg3[%c1_114, %c9_115] : memref<2x16xf32, #tpu.memory_space<smem>>
    %c1_116 = arith.constant 1 : index
    %c10_117 = arith.constant 10 : index
    %74 = memref.load %arg3[%c1_116, %c10_117] : memref<2x16xf32, #tpu.memory_space<smem>>
    %c1_118 = arith.constant 1 : index
    %c11_119 = arith.constant 11 : index
    %75 = memref.load %arg3[%c1_118, %c11_119] : memref<2x16xf32, #tpu.memory_space<smem>>
    %c1_120 = arith.constant 1 : index
    %c12_121 = arith.constant 12 : index
    %76 = memref.load %arg3[%c1_120, %c12_121] : memref<2x16xf32, #tpu.memory_space<smem>>
    %c1_122 = arith.constant 1 : index
    %c13_123 = arith.constant 13 : index
    %77 = memref.load %arg3[%c1_122, %c13_123] : memref<2x16xf32, #tpu.memory_space<smem>>
    %c1_124 = arith.constant 1 : index
    %c14_125 = arith.constant 14 : index
    %78 = memref.load %arg3[%c1_124, %c14_125] : memref<2x16xf32, #tpu.memory_space<smem>>
    %c1_126 = arith.constant 1 : index
    %c15_127 = arith.constant 15 : index
    %79 = memref.load %arg3[%c1_126, %c15_127] : memref<2x16xf32, #tpu.memory_space<smem>>
    %c0_128 = arith.constant 0 : index
    %80 = memref.load %arg4[%c0_128] : memref<2xf32, #tpu.memory_space<smem>>
    %c1_129 = arith.constant 1 : index
    %81 = memref.load %arg4[%c1_129] : memref<2xf32, #tpu.memory_space<smem>>
    %c0_130 = arith.constant 0 : index
    %c0_131 = arith.constant 0 : index
    %c0_132 = arith.constant 0 : index
    %82 = vector.load %arg5[%c0_130, %c0_131, %c0_132] : memref<2x8x128xf32, #tpu.memory_space<vmem>>, vector<1x8x128xf32>
    %83 = vector.shape_cast %82 : vector<1x8x128xf32> to vector<8x128xf32>
    %c1_133 = arith.constant 1 : index
    %c0_134 = arith.constant 0 : index
    %c0_135 = arith.constant 0 : index
    %84 = vector.load %arg5[%c1_133, %c0_134, %c0_135] : memref<2x8x128xf32, #tpu.memory_space<vmem>>, vector<1x8x128xf32>
    %85 = vector.shape_cast %84 : vector<1x8x128xf32> to vector<8x128xf32>
    %86 = vector.broadcast %80 : f32 to vector<8x128xf32>
    %87 = vector.broadcast %81 : f32 to vector<8x128xf32>
    %88 = vector.broadcast %0 : f32 to vector<8x128xf32>
    %89 = arith.mulf %88, %83 : vector<8x128xf32>
    %90 = vector.broadcast %1 : f32 to vector<8x128xf32>
    %91 = arith.mulf %90, %85 : vector<8x128xf32>
    %92 = arith.addf %89, %91 : vector<8x128xf32>
    %93 = vector.broadcast %32 : f32 to vector<8x128xf32>
    %94 = arith.addf %92, %93 : vector<8x128xf32>
    %cst = arith.constant 0.000000e+00 : f32
    %95 = vector.broadcast %cst : f32 to vector<8x128xf32>
    %96 = arith.maximumf %94, %95 : vector<8x128xf32>
    %97 = vector.broadcast %48 : f32 to vector<8x128xf32>
    %98 = arith.mulf %97, %96 : vector<8x128xf32>
    %99 = arith.addf %86, %98 : vector<8x128xf32>
    %100 = vector.broadcast %64 : f32 to vector<8x128xf32>
    %101 = arith.mulf %100, %96 : vector<8x128xf32>
    %102 = arith.addf %87, %101 : vector<8x128xf32>
    %103 = vector.broadcast %2 : f32 to vector<8x128xf32>
    %104 = arith.mulf %103, %83 : vector<8x128xf32>
    %105 = vector.broadcast %3 : f32 to vector<8x128xf32>
    %106 = arith.mulf %105, %85 : vector<8x128xf32>
    %107 = arith.addf %104, %106 : vector<8x128xf32>
    %108 = vector.broadcast %33 : f32 to vector<8x128xf32>
    %109 = arith.addf %107, %108 : vector<8x128xf32>
    %cst_136 = arith.constant 0.000000e+00 : f32
    %110 = vector.broadcast %cst_136 : f32 to vector<8x128xf32>
    %111 = arith.maximumf %109, %110 : vector<8x128xf32>
    %112 = vector.broadcast %49 : f32 to vector<8x128xf32>
    %113 = arith.mulf %112, %111 : vector<8x128xf32>
    %114 = arith.addf %99, %113 : vector<8x128xf32>
    %115 = vector.broadcast %65 : f32 to vector<8x128xf32>
    %116 = arith.mulf %115, %111 : vector<8x128xf32>
    %117 = arith.addf %102, %116 : vector<8x128xf32>
    %118 = vector.broadcast %4 : f32 to vector<8x128xf32>
    %119 = arith.mulf %118, %83 : vector<8x128xf32>
    %120 = vector.broadcast %5 : f32 to vector<8x128xf32>
    %121 = arith.mulf %120, %85 : vector<8x128xf32>
    %122 = arith.addf %119, %121 : vector<8x128xf32>
    %123 = vector.broadcast %34 : f32 to vector<8x128xf32>
    %124 = arith.addf %122, %123 : vector<8x128xf32>
    %cst_137 = arith.constant 0.000000e+00 : f32
    %125 = vector.broadcast %cst_137 : f32 to vector<8x128xf32>
    %126 = arith.maximumf %124, %125 : vector<8x128xf32>
    %127 = vector.broadcast %50 : f32 to vector<8x128xf32>
    %128 = arith.mulf %127, %126 : vector<8x128xf32>
    %129 = arith.addf %114, %128 : vector<8x128xf32>
    %130 = vector.broadcast %66 : f32 to vector<8x128xf32>
    %131 = arith.mulf %130, %126 : vector<8x128xf32>
    %132 = arith.addf %117, %131 : vector<8x128xf32>
    %133 = vector.broadcast %6 : f32 to vector<8x128xf32>
    %134 = arith.mulf %133, %83 : vector<8x128xf32>
    %135 = vector.broadcast %7 : f32 to vector<8x128xf32>
    %136 = arith.mulf %135, %85 : vector<8x128xf32>
    %137 = arith.addf %134, %136 : vector<8x128xf32>
    %138 = vector.broadcast %35 : f32 to vector<8x128xf32>
    %139 = arith.addf %137, %138 : vector<8x128xf32>
    %cst_138 = arith.constant 0.000000e+00 : f32
    %140 = vector.broadcast %cst_138 : f32 to vector<8x128xf32>
    %141 = arith.maximumf %139, %140 : vector<8x128xf32>
    %142 = vector.broadcast %51 : f32 to vector<8x128xf32>
    %143 = arith.mulf %142, %141 : vector<8x128xf32>
    %144 = arith.addf %129, %143 : vector<8x128xf32>
    %145 = vector.broadcast %67 : f32 to vector<8x128xf32>
    %146 = arith.mulf %145, %141 : vector<8x128xf32>
    %147 = arith.addf %132, %146 : vector<8x128xf32>
    %148 = vector.broadcast %8 : f32 to vector<8x128xf32>
    %149 = arith.mulf %148, %83 : vector<8x128xf32>
    %150 = vector.broadcast %9 : f32 to vector<8x128xf32>
    %151 = arith.mulf %150, %85 : vector<8x128xf32>
    %152 = arith.addf %149, %151 : vector<8x128xf32>
    %153 = vector.broadcast %36 : f32 to vector<8x128xf32>
    %154 = arith.addf %152, %153 : vector<8x128xf32>
    %cst_139 = arith.constant 0.000000e+00 : f32
    %155 = vector.broadcast %cst_139 : f32 to vector<8x128xf32>
    %156 = arith.maximumf %154, %155 : vector<8x128xf32>
    %157 = vector.broadcast %52 : f32 to vector<8x128xf32>
    %158 = arith.mulf %157, %156 : vector<8x128xf32>
    %159 = arith.addf %144, %158 : vector<8x128xf32>
    %160 = vector.broadcast %68 : f32 to vector<8x128xf32>
    %161 = arith.mulf %160, %156 : vector<8x128xf32>
    %162 = arith.addf %147, %161 : vector<8x128xf32>
    %163 = vector.broadcast %10 : f32 to vector<8x128xf32>
    %164 = arith.mulf %163, %83 : vector<8x128xf32>
    %165 = vector.broadcast %11 : f32 to vector<8x128xf32>
    %166 = arith.mulf %165, %85 : vector<8x128xf32>
    %167 = arith.addf %164, %166 : vector<8x128xf32>
    %168 = vector.broadcast %37 : f32 to vector<8x128xf32>
    %169 = arith.addf %167, %168 : vector<8x128xf32>
    %cst_140 = arith.constant 0.000000e+00 : f32
    %170 = vector.broadcast %cst_140 : f32 to vector<8x128xf32>
    %171 = arith.maximumf %169, %170 : vector<8x128xf32>
    %172 = vector.broadcast %53 : f32 to vector<8x128xf32>
    %173 = arith.mulf %172, %171 : vector<8x128xf32>
    %174 = arith.addf %159, %173 : vector<8x128xf32>
    %175 = vector.broadcast %69 : f32 to vector<8x128xf32>
    %176 = arith.mulf %175, %171 : vector<8x128xf32>
    %177 = arith.addf %162, %176 : vector<8x128xf32>
    %178 = vector.broadcast %12 : f32 to vector<8x128xf32>
    %179 = arith.mulf %178, %83 : vector<8x128xf32>
    %180 = vector.broadcast %13 : f32 to vector<8x128xf32>
    %181 = arith.mulf %180, %85 : vector<8x128xf32>
    %182 = arith.addf %179, %181 : vector<8x128xf32>
    %183 = vector.broadcast %38 : f32 to vector<8x128xf32>
    %184 = arith.addf %182, %183 : vector<8x128xf32>
    %cst_141 = arith.constant 0.000000e+00 : f32
    %185 = vector.broadcast %cst_141 : f32 to vector<8x128xf32>
    %186 = arith.maximumf %184, %185 : vector<8x128xf32>
    %187 = vector.broadcast %54 : f32 to vector<8x128xf32>
    %188 = arith.mulf %187, %186 : vector<8x128xf32>
    %189 = arith.addf %174, %188 : vector<8x128xf32>
    %190 = vector.broadcast %70 : f32 to vector<8x128xf32>
    %191 = arith.mulf %190, %186 : vector<8x128xf32>
    %192 = arith.addf %177, %191 : vector<8x128xf32>
    %193 = vector.broadcast %14 : f32 to vector<8x128xf32>
    %194 = arith.mulf %193, %83 : vector<8x128xf32>
    %195 = vector.broadcast %15 : f32 to vector<8x128xf32>
    %196 = arith.mulf %195, %85 : vector<8x128xf32>
    %197 = arith.addf %194, %196 : vector<8x128xf32>
    %198 = vector.broadcast %39 : f32 to vector<8x128xf32>
    %199 = arith.addf %197, %198 : vector<8x128xf32>
    %cst_142 = arith.constant 0.000000e+00 : f32
    %200 = vector.broadcast %cst_142 : f32 to vector<8x128xf32>
    %201 = arith.maximumf %199, %200 : vector<8x128xf32>
    %202 = vector.broadcast %55 : f32 to vector<8x128xf32>
    %203 = arith.mulf %202, %201 : vector<8x128xf32>
    %204 = arith.addf %189, %203 : vector<8x128xf32>
    %205 = vector.broadcast %71 : f32 to vector<8x128xf32>
    %206 = arith.mulf %205, %201 : vector<8x128xf32>
    %207 = arith.addf %192, %206 : vector<8x128xf32>
    %208 = vector.broadcast %16 : f32 to vector<8x128xf32>
    %209 = arith.mulf %208, %83 : vector<8x128xf32>
    %210 = vector.broadcast %17 : f32 to vector<8x128xf32>
    %211 = arith.mulf %210, %85 : vector<8x128xf32>
    %212 = arith.addf %209, %211 : vector<8x128xf32>
    %213 = vector.broadcast %40 : f32 to vector<8x128xf32>
    %214 = arith.addf %212, %213 : vector<8x128xf32>
    %cst_143 = arith.constant 0.000000e+00 : f32
    %215 = vector.broadcast %cst_143 : f32 to vector<8x128xf32>
    %216 = arith.maximumf %214, %215 : vector<8x128xf32>
    %217 = vector.broadcast %56 : f32 to vector<8x128xf32>
    %218 = arith.mulf %217, %216 : vector<8x128xf32>
    %219 = arith.addf %204, %218 : vector<8x128xf32>
    %220 = vector.broadcast %72 : f32 to vector<8x128xf32>
    %221 = arith.mulf %220, %216 : vector<8x128xf32>
    %222 = arith.addf %207, %221 : vector<8x128xf32>
    %223 = vector.broadcast %18 : f32 to vector<8x128xf32>
    %224 = arith.mulf %223, %83 : vector<8x128xf32>
    %225 = vector.broadcast %19 : f32 to vector<8x128xf32>
    %226 = arith.mulf %225, %85 : vector<8x128xf32>
    %227 = arith.addf %224, %226 : vector<8x128xf32>
    %228 = vector.broadcast %41 : f32 to vector<8x128xf32>
    %229 = arith.addf %227, %228 : vector<8x128xf32>
    %cst_144 = arith.constant 0.000000e+00 : f32
    %230 = vector.broadcast %cst_144 : f32 to vector<8x128xf32>
    %231 = arith.maximumf %229, %230 : vector<8x128xf32>
    %232 = vector.broadcast %57 : f32 to vector<8x128xf32>
    %233 = arith.mulf %232, %231 : vector<8x128xf32>
    %234 = arith.addf %219, %233 : vector<8x128xf32>
    %235 = vector.broadcast %73 : f32 to vector<8x128xf32>
    %236 = arith.mulf %235, %231 : vector<8x128xf32>
    %237 = arith.addf %222, %236 : vector<8x128xf32>
    %238 = vector.broadcast %20 : f32 to vector<8x128xf32>
    %239 = arith.mulf %238, %83 : vector<8x128xf32>
    %240 = vector.broadcast %21 : f32 to vector<8x128xf32>
    %241 = arith.mulf %240, %85 : vector<8x128xf32>
    %242 = arith.addf %239, %241 : vector<8x128xf32>
    %243 = vector.broadcast %42 : f32 to vector<8x128xf32>
    %244 = arith.addf %242, %243 : vector<8x128xf32>
    %cst_145 = arith.constant 0.000000e+00 : f32
    %245 = vector.broadcast %cst_145 : f32 to vector<8x128xf32>
    %246 = arith.maximumf %244, %245 : vector<8x128xf32>
    %247 = vector.broadcast %58 : f32 to vector<8x128xf32>
    %248 = arith.mulf %247, %246 : vector<8x128xf32>
    %249 = arith.addf %234, %248 : vector<8x128xf32>
    %250 = vector.broadcast %74 : f32 to vector<8x128xf32>
    %251 = arith.mulf %250, %246 : vector<8x128xf32>
    %252 = arith.addf %237, %251 : vector<8x128xf32>
    %253 = vector.broadcast %22 : f32 to vector<8x128xf32>
    %254 = arith.mulf %253, %83 : vector<8x128xf32>
    %255 = vector.broadcast %23 : f32 to vector<8x128xf32>
    %256 = arith.mulf %255, %85 : vector<8x128xf32>
    %257 = arith.addf %254, %256 : vector<8x128xf32>
    %258 = vector.broadcast %43 : f32 to vector<8x128xf32>
    %259 = arith.addf %257, %258 : vector<8x128xf32>
    %cst_146 = arith.constant 0.000000e+00 : f32
    %260 = vector.broadcast %cst_146 : f32 to vector<8x128xf32>
    %261 = arith.maximumf %259, %260 : vector<8x128xf32>
    %262 = vector.broadcast %59 : f32 to vector<8x128xf32>
    %263 = arith.mulf %262, %261 : vector<8x128xf32>
    %264 = arith.addf %249, %263 : vector<8x128xf32>
    %265 = vector.broadcast %75 : f32 to vector<8x128xf32>
    %266 = arith.mulf %265, %261 : vector<8x128xf32>
    %267 = arith.addf %252, %266 : vector<8x128xf32>
    %268 = vector.broadcast %24 : f32 to vector<8x128xf32>
    %269 = arith.mulf %268, %83 : vector<8x128xf32>
    %270 = vector.broadcast %25 : f32 to vector<8x128xf32>
    %271 = arith.mulf %270, %85 : vector<8x128xf32>
    %272 = arith.addf %269, %271 : vector<8x128xf32>
    %273 = vector.broadcast %44 : f32 to vector<8x128xf32>
    %274 = arith.addf %272, %273 : vector<8x128xf32>
    %cst_147 = arith.constant 0.000000e+00 : f32
    %275 = vector.broadcast %cst_147 : f32 to vector<8x128xf32>
    %276 = arith.maximumf %274, %275 : vector<8x128xf32>
    %277 = vector.broadcast %60 : f32 to vector<8x128xf32>
    %278 = arith.mulf %277, %276 : vector<8x128xf32>
    %279 = arith.addf %264, %278 : vector<8x128xf32>
    %280 = vector.broadcast %76 : f32 to vector<8x128xf32>
    %281 = arith.mulf %280, %276 : vector<8x128xf32>
    %282 = arith.addf %267, %281 : vector<8x128xf32>
    %283 = vector.broadcast %26 : f32 to vector<8x128xf32>
    %284 = arith.mulf %283, %83 : vector<8x128xf32>
    %285 = vector.broadcast %27 : f32 to vector<8x128xf32>
    %286 = arith.mulf %285, %85 : vector<8x128xf32>
    %287 = arith.addf %284, %286 : vector<8x128xf32>
    %288 = vector.broadcast %45 : f32 to vector<8x128xf32>
    %289 = arith.addf %287, %288 : vector<8x128xf32>
    %cst_148 = arith.constant 0.000000e+00 : f32
    %290 = vector.broadcast %cst_148 : f32 to vector<8x128xf32>
    %291 = arith.maximumf %289, %290 : vector<8x128xf32>
    %292 = vector.broadcast %61 : f32 to vector<8x128xf32>
    %293 = arith.mulf %292, %291 : vector<8x128xf32>
    %294 = arith.addf %279, %293 : vector<8x128xf32>
    %295 = vector.broadcast %77 : f32 to vector<8x128xf32>
    %296 = arith.mulf %295, %291 : vector<8x128xf32>
    %297 = arith.addf %282, %296 : vector<8x128xf32>
    %298 = vector.broadcast %28 : f32 to vector<8x128xf32>
    %299 = arith.mulf %298, %83 : vector<8x128xf32>
    %300 = vector.broadcast %29 : f32 to vector<8x128xf32>
    %301 = arith.mulf %300, %85 : vector<8x128xf32>
    %302 = arith.addf %299, %301 : vector<8x128xf32>
    %303 = vector.broadcast %46 : f32 to vector<8x128xf32>
    %304 = arith.addf %302, %303 : vector<8x128xf32>
    %cst_149 = arith.constant 0.000000e+00 : f32
    %305 = vector.broadcast %cst_149 : f32 to vector<8x128xf32>
    %306 = arith.maximumf %304, %305 : vector<8x128xf32>
    %307 = vector.broadcast %62 : f32 to vector<8x128xf32>
    %308 = arith.mulf %307, %306 : vector<8x128xf32>
    %309 = arith.addf %294, %308 : vector<8x128xf32>
    %310 = vector.broadcast %78 : f32 to vector<8x128xf32>
    %311 = arith.mulf %310, %306 : vector<8x128xf32>
    %312 = arith.addf %297, %311 : vector<8x128xf32>
    %313 = vector.broadcast %30 : f32 to vector<8x128xf32>
    %314 = arith.mulf %313, %83 : vector<8x128xf32>
    %315 = vector.broadcast %31 : f32 to vector<8x128xf32>
    %316 = arith.mulf %315, %85 : vector<8x128xf32>
    %317 = arith.addf %314, %316 : vector<8x128xf32>
    %318 = vector.broadcast %47 : f32 to vector<8x128xf32>
    %319 = arith.addf %317, %318 : vector<8x128xf32>
    %cst_150 = arith.constant 0.000000e+00 : f32
    %320 = vector.broadcast %cst_150 : f32 to vector<8x128xf32>
    %321 = arith.maximumf %319, %320 : vector<8x128xf32>
    %322 = vector.broadcast %63 : f32 to vector<8x128xf32>
    %323 = arith.mulf %322, %321 : vector<8x128xf32>
    %324 = arith.addf %309, %323 : vector<8x128xf32>
    %325 = vector.broadcast %79 : f32 to vector<8x128xf32>
    %326 = arith.mulf %325, %321 : vector<8x128xf32>
    %327 = arith.addf %312, %326 : vector<8x128xf32>
    %c0_151 = arith.constant 0 : index
    %c0_152 = arith.constant 0 : index
    %c0_153 = arith.constant 0 : index
    %328 = vector.load %arg6[%c0_151, %c0_152, %c0_153] : memref<2x8x128xf32, #tpu.memory_space<vmem>>, vector<1x8x128xf32>
    %329 = vector.shape_cast %328 : vector<1x8x128xf32> to vector<8x128xf32>
    %330 = vector.shape_cast %324 : vector<8x128xf32> to vector<1x8x128xf32>
    tpu.vector_store %arg6[%c0_151, %c0_152, %c0_153], %330 {strides = array<i32>} : memref<2x8x128xf32, #tpu.memory_space<vmem>>, vector<1x8x128xf32>,
    %c1_154 = arith.constant 1 : index
    %c0_155 = arith.constant 0 : index
    %c0_156 = arith.constant 0 : index
    %331 = vector.load %arg6[%c1_154, %c0_155, %c0_156] : memref<2x8x128xf32, #tpu.memory_space<vmem>>, vector<1x8x128xf32>
    %332 = vector.shape_cast %331 : vector<1x8x128xf32> to vector<8x128xf32>
    %333 = vector.shape_cast %327 : vector<8x128xf32> to vector<1x8x128xf32>
    tpu.vector_store %arg6[%c1_154, %c0_155, %c0_156], %333 {strides = array<i32>} : memref<2x8x128xf32, #tpu.memory_space<vmem>>, vector<1x8x128xf32>,
    return
  }
  func.func @transform_0(%arg0: i32) -> (i32, i32) {
    %c0_i32 = arith.constant 0 : i32
    %c0_i32_0 = arith.constant 0 : i32
    %c0_i32_1 = arith.constant 0 : i32
    return %c0_i32, %c0_i32_0 : i32, i32
  }
  func.func @transform_1(%arg0: i32) -> i32 {
    %c0_i32 = arith.constant 0 : i32
    %c0_i32_0 = arith.constant 0 : i32
    return %c0_i32 : i32
  }
  func.func @transform_2(%arg0: i32) -> (i32, i32) {
    %c0_i32 = arith.constant 0 : i32
    %c0_i32_0 = arith.constant 0 : i32
    %c0_i32_1 = arith.constant 0 : i32
    return %c0_i32, %c0_i32_0 : i32, i32
  }
  func.func @transform_3(%arg0: i32) -> i32 {
    %c0_i32 = arith.constant 0 : i32
    %c0_i32_0 = arith.constant 0 : i32
    return %c0_i32 : i32
  }
  func.func @transform_4(%arg0: i32) -> (i32, i32, i32) {
    %c0_i32 = arith.constant 0 : i32
    %c0_i32_0 = arith.constant 0 : i32
    %c0_i32_1 = arith.constant 0 : i32
    return %c0_i32, %arg0, %c0_i32_0 : i32, i32, i32
  }
  func.func @transform_5(%arg0: i32) -> (i32, i32, i32) {
    %c0_i32 = arith.constant 0 : i32
    %c0_i32_0 = arith.constant 0 : i32
    %c0_i32_1 = arith.constant 0 : i32
    return %c0_i32, %arg0, %c0_i32_0 : i32, i32, i32
  }
}

</mosaic_0001>

<bundles_post_ra>
// kernel: qnetwork_forward.1
= control target key start
LH: loop header
LB: loop body
LE: loop exit
PB: predicated region body
PF: predicated region fallthrough
CT: control target
= control target key end

     0   :  { %s922_s0 = inlined_call_operand.vmem [shape: f32[16,2], index: 0, kind: input, shape index: {}]   ;;  %s923_s1 = inlined_call_operand.vmem [shape: f32[16], index: 1, kind: input, shape index: {}]   ;;  %s924_s2 = inlined_call_operand.vmem [shape: f32[2,16], index: 2, kind: input, shape index: {}]   ;;  %s925_s3 = inlined_call_operand.vmem [shape: f32[2], index: 3, kind: input, shape index: {}]   ;;  %s926_s4 = inlined_call_operand.vmem [shape: f32[2,8,128], index: 4, kind: input, shape index: {}]   ;;  %s927_s5 = inlined_call_operand.vmem [shape: f32[2,8,128], index: 5, kind: output, shape index: {}]  }
   0x1   :  { %929 = sst [smem:[#allocation23_spill]] %s927_s5 }
   0x2   :  { %10 = vsyncpa [#allocation3], 0 }
   0x3   :  { %11 = vsyncpa [#allocation5], 0  ;;  %s31_s20 = sshll.u32 %s923_s1, 4  ;;  %s32_s20 = int_to_ptr.vmem [resolvable:$true] %s31_s20 }
   0x4   :  { %12 = vsyncpa [#allocation8], 0  ;;  %s18_s23 = sshll.u32 %s922_s0, 4  ;;  %s477_s24 = scalar_lea.vmem %s32_s20, 16  ;;  %s19_s23 = int_to_ptr.vmem [resolvable:$true] %s18_s23 }
   0x5   :  { %p478_p0 = scmp.ne.s32.totalorder %s32_s20, %s477_s24  ;;  %p482_p1 = scmp.lt.s32.totalorder %s32_s20, %s32_s20 }
   0x6   :  { %p483_p2 = scmp.lt.s32.totalorder %s477_s24, %s477_s24 }
   0x8   :  { %p484_p3 = por %p483_p2, %p482_p1 }
   0xa   :  { %p485_p4 = pnand %p484_p3, %p478_p0 }
   0xc   :  { %488 = shalt.err (!%p485_p4)
}
   0xd   :  { %s531_s25 = smov [#allocation4]   ;;  %s489_s26 = scalar_lea.vmem %s19_s23, 256 }
   0xe   :  { %34 = dma.vmem_to_smem %s32_s20, 16, %s531_s25, [#allocation5]  }
   0xf   :  { %p490_p5 = scmp.ne.s32.totalorder %s19_s23, %s489_s26  ;;  %p494_p6 = scmp.lt.s32.totalorder %s19_s23, %s19_s23 }
  0x10   :  { %p495_p7 = scmp.lt.s32.totalorder %s489_s26, %s489_s26 }
  0x12   :  { %p496_p8 = por %p495_p7, %p494_p6 }
  0x14   :  { %p497_p9 = pnand %p496_p8, %p490_p5 }
  0x16   :  { %500 = shalt.err (!%p497_p9)
}
  0x17   :  { %s532_s1 = smov [#allocation2]   ;;  %s533_s27 = smov 128  }
  0x18   :  { %s534_s0 = smov 8   ;;  %s41_s30 = sshll.u32 %s924_s2, 4  ;;  %s42_s30 = int_to_ptr.vmem [resolvable:$true] %s41_s30 }
  0x19   :  { %24 = dma.vmem_to_smem %s19_s23, 256, %s532_s1, [#allocation3], %s533_s27, %s533_s27, %s534_s0  }
  0x1a   :  { %s51_s8 = sshll.u32 %s925_s3, 4  ;;  %s501_s9 = scalar_lea.vmem %s42_s30, 32  ;;  %s52_s8 = int_to_ptr.vmem [resolvable:$true] %s51_s8 }
  0x1b   :  { %p502_p10 = scmp.ne.s32.totalorder %s42_s30, %s501_s9  ;;  %p506_p11 = scmp.lt.s32.totalorder %s42_s30, %s42_s30 }
  0x1c   :  { %p507_p12 = scmp.lt.s32.totalorder %s501_s9, %s501_s9 }
  0x1e   :  { %p508_p13 = por %p507_p12, %p506_p11 }
  0x20   :  { %p509_p0 = pnand %p508_p13, %p502_p10 }
  0x22   :  { %512 = shalt.err (!%p509_p0)
}
  0x23   :  { %s535_s10 = smov [#allocation6]   ;;  %s513_s11 = scalar_lea.vmem %s52_s8, 16 }
  0x24   :  { %44 = dma.vmem_to_smem %s42_s30, 32, %s535_s10, [#allocation5]  }
  0x25   :  { %p514_p1 = scmp.ne.s32.totalorder %s52_s8, %s513_s11  ;;  %p518_p2 = scmp.lt.s32.totalorder %s52_s8, %s52_s8 }
  0x26   :  { %p519_p3 = scmp.lt.s32.totalorder %s513_s11, %s513_s11 }
  0x28   :  { %p520_p4 = por %p519_p3, %p518_p2 }
  0x2a   :  { %p521_p5 = pnand %p520_p4, %p514_p1 }
  0x2c   :  { %524 = shalt.err (!%p521_p5)
}
  0x2d   :  { %s536_s2 = smov [#allocation7]  }
  0x2e   :  { %54 = dma.vmem_to_smem %s52_s8, 16, %s536_s2, [#allocation8]  }
  0x2f   :  { %525 = dma.done.wait [#allocation3], 256  }
  0x30   :  { %526 = vsyncadd [#allocation3], 4294967040 }
  0x31   :  { %527 = dma.done.wait [#allocation5], 48  }
  0x32   :  { %528 = vsyncadd [#allocation5], 4294967248 }
  0x33   :  { %529 = dma.done.wait [#allocation8], 16  }
  0x34   :  { %530 = vsyncadd [#allocation8], 4294967280 }
  0x35   :  { %69 = sfence }
  0x36   :  { %s579_s3 = sld [smem:[#allocation2]]  ;;  %v652_v0 = vld [vmem:[%s926_s4] sm:$0xff]  ;;  %v657_v1 = vld [vmem:[%s926_s4 + $0x8] sm:$0xff] }
  0x37   :  { %s581_s12 = sld [smem:[#allocation2 + $0x1]] }
  0x38   :  { %s583_s13 = sld [smem:[#allocation2 + $0x80]] }
  0x39   :  { %s585_s14 = sld [smem:[#allocation2 + $0x81]] }
  0x3a   :  { %s587_s15 = sld [smem:[#allocation2 + $0x100]] }
  0x3b   :  { %s589_s16 = sld [smem:[#allocation2 + $0x101]] }
  0x3c   :  { %s591_s17 = sld [smem:[#allocation2 + $0x180]]  ;;  %v157_v2 = vstv %s579_s3 }
  0x3d   :  { %s593_s18 = sld [smem:[#allocation2 + $0x181]]  ;;  %v159_v3 = vstv %s581_s12  ;;  %v158_v10 = vmul.f32 %v157_v2, %v652_v0 }
  0x3e   :  { %s595_s19 = sld [smem:[#allocation2 + $0x200]]  ;;  %v171_v4 = vstv %s583_s13  ;;  %v160_v11 = vmul.f32 %v657_v1, %v159_v3 }
  0x3f   :  { %s597_s20 = sld [smem:[#allocation2 + $0x201]]  ;;  %v173_v5 = vstv %s585_s14  ;;  %v172_v14 = vmul.f32 %v171_v4, %v652_v0 }
  0x40   :  { %s599_s21 = sld [smem:[#allocation2 + $0x280]]  ;;  %v185_v6 = vstv %s587_s15  ;;  %v174_v15 = vmul.f32 %v657_v1, %v173_v5  ;;  %v161_v42 = vadd.f32 %v160_v11, %v158_v10 }
  0x41   :  { %s601_s22 = sld [smem:[#allocation2 + $0x281]]  ;;  %v187_v7 = vstv %s589_s16  ;;  %v186_v16 = vmul.f32 %v185_v6, %v652_v0 }
  0x42   :  { %s603_s23 = sld [smem:[#allocation2 + $0x300]]  ;;  %v199_v8 = vstv %s591_s17  ;;  %v188_v17 = vmul.f32 %v657_v1, %v187_v7  ;;  %v175_v43 = vadd.f32 %v174_v15, %v172_v14 }
  0x43   :  { %s605_s24 = sld [smem:[#allocation2 + $0x301]]  ;;  %v201_v9 = vstv %s593_s18  ;;  %v200_v18 = vmul.f32 %v199_v8, %v652_v0 }
  0x44   :  { %s607_s25 = sld [smem:[#allocation2 + $0x380]]  ;;  %v213_v12 = vstv %s595_s19  ;;  %v202_v19 = vmul.f32 %v657_v1, %v201_v9  ;;  %v189_v46 = vadd.f32 %v188_v17, %v186_v16 }
  0x45   :  { %s609_s26 = sld [smem:[#allocation2 + $0x381]]  ;;  %v215_v13 = vstv %s597_s20  ;;  %v214_v22 = vmul.f32 %v213_v12, %v652_v0 }
  0x46   :  { %s611_s1 = sld [smem:[#allocation2 + $0x400]]  ;;  %v227_v20 = vstv %s599_s21  ;;  %v216_v23 = vmul.f32 %v657_v1, %v215_v13  ;;  %v203_v50 = vadd.f32 %v202_v19, %v200_v18 }
  0x47   :  { %s613_s27 = sld [smem:[#allocation2 + $0x401]]  ;;  %v229_v21 = vstv %s601_s22  ;;  %v228_v30 = vmul.f32 %v227_v20, %v652_v0 }
  0x48   :  { %s615_s0 = sld [smem:[#allocation2 + $0x480]]  ;;  %v241_v24 = vstv %s603_s23  ;;  %v230_v31 = vmul.f32 %v657_v1, %v229_v21  ;;  %v217_v51 = vadd.f32 %v216_v23, %v214_v22 }
  0x49   :  { %s617_s28 = sld [smem:[#allocation2 + $0x481]]  ;;  %v243_v25 = vstv %s605_s24  ;;  %v242_v34 = vmul.f32 %v241_v24, %v652_v0 }
  0x4a   :  { %s619_s29 = sld [smem:[#allocation2 + $0x500]]  ;;  %v255_v26 = vstv %s607_s25  ;;  %v244_v35 = vmul.f32 %v657_v1, %v243_v25  ;;  %v231_v52 = vadd.f32 %v230_v31, %v228_v30 }
  0x4b   :  { %s621_s30 = sld [smem:[#allocation2 + $0x501]]  ;;  %v257_v27 = vstv %s609_s26  ;;  %v256_v38 = vmul.f32 %v255_v26, %v652_v0 }
  0x4c   :  { %s623_s6 = sld [smem:[#allocation2 + $0x580]]  ;;  %v269_v28 = vstv %s611_s1  ;;  %v258_v39 = vmul.f32 %v657_v1, %v257_v27  ;;  %v245_v54 = vadd.f32 %v244_v35, %v242_v34 }
  0x4d   :  { %s625_s7 = sld [smem:[#allocation2 + $0x581]]  ;;  %v271_v29 = vstv %s613_s27  ;;  %v270_v40 = vmul.f32 %v269_v28, %v652_v0 }
  0x4e   :  { %s627_s8 = sld [smem:[#allocation2 + $0x600]]  ;;  %v283_v32 = vstv %s615_s0  ;;  %v272_v41 = vmul.f32 %v657_v1, %v271_v29  ;;  %v259_v55 = vadd.f32 %v258_v39, %v256_v38 }
  0x4f   :  { %s629_s9 = sld [smem:[#allocation2 + $0x601]]  ;;  %v285_v33 = vstv %s617_s28  ;;  %v284_v44 = vmul.f32 %v283_v32, %v652_v0 }
  0x50   :  { %930 = sst [smem:[#allocation12_spill]] %s619_s29  ;;  %v286_v45 = vmul.f32 %v657_v1, %v285_v33  ;;  %v733_v56 = vadd.f32 %v272_v41, %v270_v40 }
  0x51   :  { %931 = sst [smem:[#allocation13_spill]] %s621_s30 }
  0x52   :  { %932 = sst [smem:[#allocation14_spill]] %s623_s6  ;;  %v738_v58 = vadd.f32 %v286_v45, %v284_v44 }
  0x53   :  { %933 = sst [smem:[#allocation15_spill]] %s625_s7 }
  0x54   :  { %934 = sst [smem:[#allocation16_spill]] %s627_s8 }
  0x55   :  { %935 = sst [smem:[#allocation17_spill]] %s629_s9 }
  0x56   :  { %s631_s10 = sld [smem:[#allocation2 + $0x680]] }
  0x57   :  { %s633_s11 = sld [smem:[#allocation2 + $0x681]] }
  0x58   :  { %s635_s2 = sld [smem:[#allocation2 + $0x700]] }
  0x59   :  { %s637_s5 = sld [smem:[#allocation2 + $0x701]] }
  0x5a   :  { %s639_s6 = sld [smem:[#allocation2 + $0x780]] }
  0x5b   :  { %s641_s7 = sld [smem:[#allocation2 + $0x781]] }
  0x5c   :  { %936 = sst [smem:[#allocation18_spill]] %s631_s10 }
  0x5d   :  { %s643_s8 = sld [smem:[#allocation4]]  ;;  %v341_v3 = vstv %s633_s11 }
  0x5e   :  { %937 = sst [smem:[#allocation19_spill]] %s635_s2  ;;  %v342_v15 = vmul.f32 %v657_v1, %v341_v3 }
  0x5f   :  { %938 = sst [smem:[#allocation20_spill]] %s637_s5 }
  0x60   :  { %s645_s9 = sld [smem:[#allocation4 + $0x1]]  ;;  %v367_v7 = vstv %s639_s6 }
  0x61   :  { %939 = sst [smem:[#allocation21_spill]] %s641_s7  ;;  %v368_v19 = vmul.f32 %v367_v7, %v652_v0 }
  0x62   :  { %s647_s30 = sld [smem:[#allocation4 + $0x2]] }
  0x63   :  { %s661_s7 = sld [smem:[#allocation4 + $0x3]]  ;;  %v162_v62 = vstv %s643_s8 }
  0x64   :  { %s671_s29 = sld [smem:[#allocation4 + $0x5]]  ;;  %v163_v12 = vadd.f32 %v162_v62, %v161_v42 }
  0x65   :  { %s677_s4 = sld [smem:[#allocation4 + $0x6]] }
  0x66   :  { %s683_s5 = sld [smem:[#allocation4 + $0x7]]  ;;  %v176_v8 = vstv %s645_s9 }
  0x67   :  { %s689_s3 = sld [smem:[#allocation4 + $0x8]]  ;;  %v177_v20 = vadd.f32 %v176_v8, %v175_v43 }
  0x68   :  { %940 = sst [smem:[#allocation22_spill]] %s647_s30 }
  0x69   :  { %s667_s30 = sld [smem:[#allocation4 + $0x4]]  ;;  %v204_v14 = vstv %s661_s7  ;;  %v178_v35 = vmax.f32 %v177_v20, 0.0 }
  0x6a   :  { %s941_s12 = sld [smem:[#allocation12_spill]]  ;;  %v232_v21 = vstv %s671_s29  ;;  %v205_v25 = vadd.f32 %v204_v14, %v203_v50 }
  0x6b   :  { %s942_s13 = sld [smem:[#allocation13_spill]]  ;;  %v246_v22 = vstv %s677_s4  ;;  %v794_v31 = vadd.f32 %v232_v21, %v231_v52 }
  0x6c   :  { %s695_s14 = sld [smem:[#allocation4 + $0x9]]  ;;  %v260_v26 = vstv %s683_s5  ;;  %v796_v32 = vadd.f32 %v246_v22, %v245_v54  ;;  %v206_v40 = vmax.f32 %v205_v25, 0.0 }
  0x6d   :  { %s701_s15 = sld [smem:[#allocation4 + $0xa]]  ;;  %v274_v41 = vstv %s689_s3 }
  0x6e   :  { %s707_s16 = sld [smem:[#allocation4 + $0xb]] }
  0x6f   :  { %s943_s17 = sld [smem:[#allocation14_spill]]  ;;  %v218_v16 = vstv %s667_s30 }
  0x70   :  { %v297_v36 = vstv %s941_s12  ;;  %s713_s18 = sld [smem:[#allocation4 + $0xc]]  ;;  %v785_v28 = vadd.f32 %v218_v16, %v217_v51 }
  0x71   :  { %v299_v37 = vstv %s942_s13  ;;  %s944_s19 = sld [smem:[#allocation15_spill]]  ;;  %v298_v47 = vmul.f32 %v297_v36, %v652_v0  ;;  %v803_v36 = vadd.f32 %v260_v26, %v259_v55 }
  0x72   :  { %s719_s20 = sld [smem:[#allocation4 + $0xd]]  ;;  %v300_v48 = vmul.f32 %v657_v1, %v299_v37  ;;  %v220_v44 = vmax.f32 %v785_v28, 0.0  ;;  %v288_v45 = vstv %s695_s14 }
  0x73   :  { %s945_s21 = sld [smem:[#allocation16_spill]]  ;;  %v262_v52 = vmax.f32 %v803_v36, 0.0 }
  0x74   :  { %s723_s22 = sld [smem:[#allocation4 + $0xe]]  ;;  %v746_v63 = vadd.f32 %v300_v48, %v298_v47  ;;  %v234_v48 = vmax.f32 %v794_v31, 0.0 }
  0x75   :  { %s946_s23 = sld [smem:[#allocation17_spill]]  ;;  %v311_v49 = vstv %s943_s17 }
  0x76   :  { %s947_s24 = sld [smem:[#allocation18_spill]]  ;;  %v312_v59 = vmul.f32 %v311_v49, %v652_v0  ;;  %v248_v49 = vmax.f32 %v796_v32, 0.0 }
  0x77   :  { %s728_s25 = sld [smem:[#allocation4 + $0xf]]  ;;  %v313_v53 = vstv %s944_s19 }
  0x78   :  { %s731_s26 = sld [smem:[#allocation6]]  ;;  %v314_v2 = vmul.f32 %v657_v1, %v313_v53  ;;  %v826_v53 = vadd.f32 %v274_v41, %v733_v56 }
  0x79   :  { %s948_s1 = sld [smem:[#allocation19_spill]]  ;;  %v325_v57 = vstv %s945_s21 }
  0x7a   :  { %s949_s27 = sld [smem:[#allocation20_spill]]  ;;  %v326_v4 = vmul.f32 %v325_v57, %v652_v0  ;;  %v781_v27 = vadd.f32 %v314_v2, %v312_v59  ;;  %v833_v59 = vadd.f32 %v288_v45, %v738_v58  ;;  %v276_v8 = vmax.f32 %v826_v53, 0.0 }
  0x7b   :  { %s736_s0 = sld [smem:[#allocation6 + $0x1]]  ;;  %v327_v60 = vstv %s946_s23  ;;  %v358_v36 = vstv %s723_s22 }
  0x7c   :  { %s950_s28 = sld [smem:[#allocation21_spill]]  ;;  %v339_v61 = vstv %s947_s24  ;;  %v328_v9 = vmul.f32 %v657_v1, %v327_v60  ;;  %v290_v20 = vmax.f32 %v833_v59, 0.0 }
  0x7d   :  { %s743_s10 = sld [smem:[#allocation6 + $0x2]]  ;;  %v340_v10 = vmul.f32 %v339_v61, %v652_v0 }
  0x7e   :  { %s951_s2 = sld [smem:[#allocation22_spill]]  ;;  %v787_v29 = vadd.f32 %v328_v9, %v326_v4 }
  0x7f   :  { %s750_s12 = sld [smem:[#allocation6 + $0x80]]  ;;  %v353_v5 = vstv %s948_s1  ;;  %v789_v30 = vadd.f32 %v342_v15, %v340_v10 }
  0x80   :  { %v355_v6 = vstv %s949_s27  ;;  %s756_s13 = sld [smem:[#allocation6 + $0x3]]  ;;  %v354_v17 = vmul.f32 %v353_v5, %v652_v0  ;;  %v164_v0 = vmax.f32 %v163_v12, 0.0  ;;  %v302_v5 = vstv %s701_s15 }
  0x81   :  { %s762_s8 = sld [smem:[#allocation6 + $0x81]]  ;;  %v356_v18 = vmul.f32 %v657_v1, %v355_v6  ;;  %v179_v38 = vstv %s736_s0  ;;  %v316_v12 = vstv %s707_s16  ;;  %v855_v16 = vadd.f32 %v302_v5, %v746_v63 }
  0x82   :  { %v369_v11 = vstv %s950_s28  ;;  %s767_s11 = sld [smem:[#allocation6 + $0x4]]  ;;  %v180_v50 = vmul.f32 %v179_v38, %v178_v35  ;;  %v344_v38 = vstv %s719_s20 }
  0x83   :  { %s773_s6 = sld [smem:[#allocation6 + $0x82]]  ;;  %v370_v23 = vmul.f32 %v657_v1, %v369_v11  ;;  %v165_v1 = vstv %s731_s26  ;;  %v798_v33 = vadd.f32 %v356_v18, %v354_v17  ;;  %v193_v47 = vstv %s743_s10 }
  0x84   :  { %v190_v13 = vstv %s951_s2  ;;  %s778_s7 = sld [smem:[#allocation6 + $0x83]]  ;;  %v166_v42 = vmul.f32 %v165_v1, %v164_v0  ;;  %v304_v32 = vmax.f32 %v855_v16, 0.0 }
  0x85   :  { %v191_v24 = vadd.f32 %v190_v13, %v189_v46  ;;  %s783_s30 = sld [smem:[#allocation6 + $0x84]]  ;;  %v168_v34 = vstv %s750_s12  ;;  %v805_v37 = vadd.f32 %v370_v23, %v368_v19 }
  0x86   :  { %s791_s9 = sld [smem:[#allocation7]]  ;;  %v169_v46 = vmul.f32 %v168_v34, %v164_v0  ;;  %v207_v57 = vstv %s756_s13  ;;  %v330_v0 = vstv %s713_s18 }
  0x87   :  { %s800_s29 = sld [smem:[#allocation7 + $0x1]]  ;;  %v192_v39 = vmax.f32 %v191_v24, 0.0  ;;  %v182_v43 = vstv %s762_s8  ;;  %v208_v58 = vmul.f32 %v207_v57, %v206_v40  ;;  %v317_v24 = vadd.f32 %v316_v12, %v781_v27 }
  0x88   :  { %s807_s4 = sld [smem:[#allocation6 + $0x5]]  ;;  %v183_v55 = vmul.f32 %v182_v43, %v178_v35  ;;  %v221_v4 = vstv %s767_s11 }
  0x89   :  { %s811_s5 = sld [smem:[#allocation6 + $0x85]]  ;;  %v196_v51 = vstv %s773_s6  ;;  %v194_v62 = vmul.f32 %v193_v47, %v192_v39  ;;  %v222_v14 = vmul.f32 %v221_v4, %v220_v44 }
  0x8a   :  { %s816_s17 = sld [smem:[#allocation6 + $0x6]]  ;;  %v210_v2 = vstv %s778_s7  ;;  %v197_v3 = vmul.f32 %v196_v51, %v192_v39 }
  0x8b   :  { %s821_s3 = sld [smem:[#allocation6 + $0x86]]  ;;  %v224_v7 = vstv %s783_s30  ;;  %v211_v10 = vmul.f32 %v210_v2, %v206_v40 }
  0x8c   :  { %s828_s14 = sld [smem:[#allocation6 + $0x7]]  ;;  %v155_v54 = vstv %s791_s9  ;;  %v225_v18 = vmul.f32 %v224_v7, %v220_v44 }
  0x8d   :  { %s835_s19 = sld [smem:[#allocation6 + $0x87]]  ;;  %v156_v60 = vstv %s800_s29  ;;  %v167_v61 = vadd.f32 %v166_v42, %v155_v54  ;;  %v331_v42 = vadd.f32 %v330_v0, %v787_v29 }
  0x8e   :  { %s839_s21 = sld [smem:[#allocation6 + $0x8]]  ;;  %v170_v56 = vadd.f32 %v169_v46, %v156_v60  ;;  %v235_v11 = vstv %s807_s4  ;;  %v318_v46 = vmax.f32 %v317_v24, 0.0 }
  0x8f   :  { %s843_s23 = sld [smem:[#allocation6 + $0x88]]  ;;  %v181_v6 = vadd.f32 %v180_v50, %v167_v61  ;;  %v238_v15 = vstv %s811_s5  ;;  %v236_v22 = vmul.f32 %v235_v11, %v234_v48  ;;  %v345_v50 = vadd.f32 %v344_v38, %v789_v30 }
  0x90   :  { %s847_s24 = sld [smem:[#allocation6 + $0x9]]  ;;  %v184_v9 = vadd.f32 %v183_v55, %v170_v56  ;;  %v249_v19 = vstv %s816_s17  ;;  %v239_v25 = vmul.f32 %v238_v15, %v234_v48  ;;  %v332_v57 = vmax.f32 %v331_v42, 0.0 }
  0x91   :  { %s851_s26 = sld [smem:[#allocation6 + $0x89]]  ;;  %v195_v13 = vadd.f32 %v194_v62, %v181_v6  ;;  %v252_v23 = vstv %s821_s3  ;;  %v250_v1 = vmul.f32 %v249_v19, %v248_v49  ;;  %v372_v61 = vstv %s728_s25 }
  0x92   :  { %s857_s15 = sld [smem:[#allocation6 + $0xa]]  ;;  %v198_v17 = vadd.f32 %v197_v3, %v184_v9  ;;  %v263_v26 = vstv %s828_s14  ;;  %v253_v35 = vmul.f32 %v252_v23, %v248_v49  ;;  %v359_v3 = vadd.f32 %v358_v36, %v798_v33 }
  0x93   :  { %s861_s1 = sld [smem:[#allocation6 + $0x8a]]  ;;  %v209_v21 = vadd.f32 %v208_v58, %v195_v13  ;;  %v266_v31 = vstv %s835_s19  ;;  %v264_v40 = vmul.f32 %v263_v26, %v262_v52  ;;  %v346_v58 = vmax.f32 %v345_v50, 0.0 }
  0x94   :  { %s865_s16 = sld [smem:[#allocation6 + $0xb]]  ;;  %v212_v63 = vadd.f32 %v211_v10, %v198_v17  ;;  %v277_v27 = vstv %s839_s21  ;;  %v267_v44 = vmul.f32 %v266_v31, %v262_v52  ;;  %v373_v10 = vadd.f32 %v372_v61, %v805_v37 }
  0x95   :  { %s869_s27 = sld [smem:[#allocation6 + $0x8b]]  ;;  %v223_v28 = vadd.f32 %v222_v14, %v209_v21  ;;  %v280_v41 = vstv %s843_s23  ;;  %v278_v48 = vmul.f32 %v277_v27, %v276_v8  ;;  %v360_v33 = vmax.f32 %v359_v3, 0.0 }
  0x96   :  { %s873_s0 = sld [smem:[#allocation6 + $0xc]]  ;;  %v226_v34 = vadd.f32 %v225_v18, %v212_v63  ;;  %v291_v45 = vstv %s847_s24  ;;  %v281_v51 = vmul.f32 %v280_v41, %v276_v8  ;;  %v374_v23 = vmax.f32 %v373_v10, 0.0 }
  0x97   :  { %s877_s28 = sld [smem:[#allocation6 + $0x8c]]  ;;  %v237_v39 = vadd.f32 %v236_v22, %v223_v28  ;;  %v294_v49 = vstv %s851_s26  ;;  %v292_v54 = vmul.f32 %v291_v45, %v290_v20 }
  0x98   :  { %s883_s18 = sld [smem:[#allocation6 + $0xd]]  ;;  %v240_v43 = vadd.f32 %v239_v25, %v226_v34  ;;  %v305_v53 = vstv %s857_s15  ;;  %v295_v60 = vmul.f32 %v294_v49, %v290_v20 }
  0x99   :  { %s888_s20 = sld [smem:[#allocation6 + $0x8d]]  ;;  %v251_v47 = vadd.f32 %v250_v1, %v237_v39  ;;  %v308_v55 = vstv %s861_s1  ;;  %v306_v2 = vmul.f32 %v305_v53, %v304_v32 }
  0x9a   :  { %s892_s10 = sld [smem:[#allocation6 + $0xe]]  ;;  %v254_v29 = vadd.f32 %v253_v35, %v240_v43  ;;  %v319_v30 = vstv %s865_s16  ;;  %v309_v5 = vmul.f32 %v308_v55, %v304_v32 }
  0x9b   :  { %s896_s2 = sld [smem:[#allocation6 + $0x8e]]  ;;  %v265_v52 = vadd.f32 %v264_v40, %v251_v47  ;;  %v322_v56 = vstv %s869_s27  ;;  %v320_v8 = vmul.f32 %v319_v30, %v318_v46 }
  0x9c   :  { %s899_s12 = sld [smem:[#allocation6 + $0xf]]  ;;  %v268_v59 = vadd.f32 %v267_v44, %v254_v29  ;;  %v333_v6 = vstv %s873_s0  ;;  %v323_v12 = vmul.f32 %v322_v56, %v318_v46 }
  0x9d   :  { %s903_s13 = sld [smem:[#allocation6 + $0x8f]]  ;;  %v279_v62 = vadd.f32 %v278_v48, %v265_v52  ;;  %v336_v9 = vstv %s877_s28  ;;  %v334_v15 = vmul.f32 %v333_v6, %v332_v57 }
  0x9e   :  { %v282_v4 = vadd.f32 %v281_v51, %v268_v59  ;;  %v347_v13 = vstv %s883_s18  ;;  %v337_v18 = vmul.f32 %v336_v9, %v332_v57  ;;  %s952_s8 = sld [smem:[#allocation23_spill]] }
  0x9f   :  { %v293_v7 = vadd.f32 %v292_v54, %v279_v62  ;;  %v350_v16 = vstv %s888_s20  ;;  %v348_v21 = vmul.f32 %v347_v13, %v346_v58 }
  0xa0   :  { %v296_v11 = vadd.f32 %v295_v60, %v282_v4  ;;  %v361_v19 = vstv %s892_s10  ;;  %v351_v63 = vmul.f32 %v350_v16, %v346_v58 }
  0xa1   :  { %v307_v14 = vadd.f32 %v306_v2, %v293_v7  ;;  %v364_v22 = vstv %s896_s2  ;;  %v362_v26 = vmul.f32 %v361_v19, %v360_v33 }
  0xa2   :  { %v310_v17 = vadd.f32 %v309_v5, %v296_v11  ;;  %v375_v25 = vstv %s899_s12  ;;  %v365_v1 = vmul.f32 %v364_v22, %v360_v33 }
  0xa3   :  { %v321_v20 = vadd.f32 %v320_v8, %v307_v14  ;;  %v378_v0 = vstv %s903_s13  ;;  %v376_v32 = vmul.f32 %v375_v25, %v374_v23 }
  0xa4   :  { %v324_v24 = vadd.f32 %v323_v12, %v310_v17  ;;  %v379_v35 = vmul.f32 %v378_v0, %v374_v23 }
  0xa5   :  { %v335_v37 = vadd.f32 %v334_v15, %v321_v20 }
  0xa6   :  { %v338_v28 = vadd.f32 %v337_v18, %v324_v24 }
  0xa7   :  { %v349_v31 = vadd.f32 %v348_v21, %v335_v37 }
  0xa8   :  { %v352_v34 = vadd.f32 %v351_v63, %v338_v28 }
  0xa9   :  { %v363_v27 = vadd.f32 %v362_v26, %v349_v31 }
  0xaa   :  { %v366_v38 = vadd.f32 %v365_v1, %v352_v34 }
  0xab   :  { %v377_v39 = vadd.f32 %v376_v32, %v363_v27 }
  0xac   :  { %v380_v40 = vadd.f32 %v379_v35, %v366_v38 }
  0xad   :  { %381 = vst [vmem:[%s952_s8] sm:$0xff] %v377_v39 }
  0xae   :  { %470 = vst [vmem:[%s952_s8 + $0x8] sm:$0xff] %v380_v40 }
  0xaf   :  { %388 = vsyncpa [#allocation3], 1 }
  0xb0   :  { %389 = vsyncpa [#allocation5], 1 }
  0xb1   :  { %390 = vsyncpa [#allocation8], 1 }

</bundles_post_ra>
